<compile_context>
chip_gen: v6e
topology: v6e:2x2x1
jax: 0.10.0
libtpu: 0.0.40
codegen_flags: <defaults>
</compile_context>

<pallas_src>
import functools

import jax
import jax.numpy as jnp
from jax.experimental import pallas as pl
from jax.experimental.pallas import tpu as pltpu


def _round_up(x, m):
    return ((x + m - 1) // m) * m


def _pick_batch_tile(batch, tb_max=1024):
    """Batch tile: multiple of 8 (sublane rule); large enough to amortize the
    ~0.35us per-grid-step overhead; for large batches keep >= 2 grid steps so
    the 'parallel' batch axis can be sharded across v7x's two TensorCores."""
    b8 = _round_up(batch, 8)
    if b8 <= 256:
        return b8                                  # one small tile, whole batch
    tb = _round_up(-(-b8 // 2), 256)               # ceil(b8/2) rounded to 256
    return min(tb_max, tb, b8)


def _disc_kernel(z_ref, w1_ref, b1_ref, w2_ref, b2_ref, w3_ref, b3_ref, o_ref):
    # z_ref : (TB, D)   f32 batch tile
    # w1_ref: (D, 512)  bf16 (resident, single-buffered)
    # b1_ref: (1, 512)  f32
    # w2_ref: (512, 256) bf16
    # b2_ref: (1, 256)  f32
    # w3_ref: (1, 256)  f32 (PyTorch Linear(256,1) weight as a row)
    # b3_ref: (1, 1)    f32
    # o_ref : (TB, 1)   f32

    # Layer 1: bf16 MXU matmul, f32 accumulate; bias + LeakyReLU in f32 (VPU).
    z = z_ref[...].astype(jnp.bfloat16)
    h = jnp.dot(z, w1_ref[...], preferred_element_type=jnp.float32) + b1_ref[...]
    h = jnp.maximum(h, 0.2 * h)                      # LeakyReLU(0.2)

    # Layer 2.
    h = jnp.dot(h.astype(jnp.bfloat16), w2_ref[...],
                preferred_element_type=jnp.float32) + b2_ref[...]
    h = jnp.maximum(h, 0.2 * h)                      # LeakyReLU(0.2)

    # Layer 3: Linear(256 -> 1) as multiply + lane reduction (avoids N=1 matmul).
    logit = jnp.sum(h * w3_ref[...], axis=-1, keepdims=True) + b3_ref[...]

    # Sigmoid: exp and approximate reciprocal both go to the EUP slot.
    o_ref[...] = pl.reciprocal(1.0 + jnp.exp(-logit), approx=True).astype(o_ref.dtype)


@functools.partial(jax.jit, static_argnames=("tb_max",))
def discriminator_forward(z, w1, b1, w2, b2, w3, b3, *, tb_max=1024):
    """z: (B, D) f32 -> (B, 1) f32.  Weights in x@W layout (in, out); w3 is (1, 256)."""
    B, D = z.shape
    H1 = w1.shape[1]          # 512
    H2 = w2.shape[1]          # 256
    assert w1.shape == (D, H1) and b1.shape == (1, H1)
    assert w2.shape == (H1, H2) and b2.shape == (1, H2)
    assert w3.shape == (1, H2) and b3.shape == (1, 1)

    # Feed the MXU bf16: cast the two large resident weights (halves their
    # HBM/VMEM footprint).  Biases / w3 / b3 stay f32 for f32 VPU math.
    w1 = w1.astype(jnp.bfloat16)
    w2 = w2.astype(jnp.bfloat16)

    tb = _pick_batch_tile(B, tb_max)
    grid = (pl.cdiv(B, tb),)                     # ragged last block is masked

    bytes_accessed = (4 * B * D + 4 * B                       # z in, validity out
                      + 2 * (D * H1 + H1 * H2)                # bf16 weights
                      + 4 * (H1 + H2 + H2 + 1))               # biases + w3
    flops = 2 * B * (D * H1 + H1 * H2 + H2) + 4 * B * (H1 + H2)

    resident = dict(pipeline_mode=pl.Buffered(1))   # grid-invariant: 1 buffer

    out = pl.pallas_call(
        _disc_kernel,
        out_shape=jax.ShapeDtypeStruct((B, 1), z.dtype),
        grid_spec=pltpu.PrefetchScalarGridSpec(
            num_scalar_prefetch=0,
            grid=grid,
            in_specs=[
                pl.BlockSpec((tb, D), lambda i: (i, 0)),                 # z tile
                pl.BlockSpec((D, H1), lambda i: (0, 0), **resident),     # W1
                pl.BlockSpec((1, H1), lambda i: (0, 0), **resident),     # b1
                pl.BlockSpec((H1, H2), lambda i: (0, 0), **resident),    # W2
                pl.BlockSpec((1, H2), lambda i: (0, 0), **resident),     # b2
                pl.BlockSpec((1, H2), lambda i: (0, 0), **resident),     # W3 row
                pl.BlockSpec((1, 1), lambda i: (0, 0), **resident),      # b3
            ],
            out_specs=pl.BlockSpec((tb, 1), lambda i: (i, 0)),
        ),
        compiler_params=pltpu.CompilerParams(
            dimension_semantics=("parallel",)),      # megacore-shardable batch
        cost_estimate=pl.CostEstimate(
            flops=int(flops),
            transcendentals=int(2 * B),
            bytes_accessed=int(bytes_accessed)),
    )(z, w1, b1, w2, b2, w3, b3)
    return out


def _reference_forward(z, w1, b1, w2, b2, w3, b3):
    h = z @ w1 + b1
    h = jnp.where(h >= 0, h, 0.2 * h)
    h = h @ w2 + b2
    h = jnp.where(h >= 0, h, 0.2 * h)
    logit = h @ w3.T + b3
    return jax.nn.sigmoid(logit)


if __name__ == "__main__":
    # Small, deterministic shapes consistent with the module:
    # batch=8, latent_dim=64; hidden widths fixed by the module (512, 256, 1).
    B, D, H1, H2 = 8, 64, 512, 256

    key = jax.random.PRNGKey(0)
    kz, kz2, k1, k2, k3, kb1, kb2, kb3 = jax.random.split(key, 8)

    z = jax.random.normal(kz, (B, D), dtype=jnp.float32)
    w1 = 0.05 * jax.random.normal(k1, (D, H1), dtype=jnp.float32)
    b1 = 0.05 * jax.random.normal(kb1, (1, H1), dtype=jnp.float32)
    w2 = 0.05 * jax.random.normal(k2, (H1, H2), dtype=jnp.float32)
    b2 = 0.05 * jax.random.normal(kb2, (1, H2), dtype=jnp.float32)
    w3 = 0.05 * jax.random.normal(k3, (1, H2), dtype=jnp.float32)
    b3 = 0.05 * jax.random.normal(kb3, (1, 1), dtype=jnp.float32)

    out = jax.block_until_ready(
        discriminator_forward(z, w1, b1, w2, b2, w3, b3))
    ref = _reference_forward(z, w1, b1, w2, b2, w3, b3)
    assert out.shape == (B, 1)
    # bf16 matmul operands + approx reciprocal -> relaxed tolerance vs f32 ref.
    assert jnp.allclose(out, ref, rtol=2e-2, atol=1e-2), "mismatch vs reference"

    # Second check: ragged multi-step batch (exercises the no-pad partial last
    # block and the >=2-step 'parallel' grid used to feed both v7x cores).
    B2 = 384
    z2 = jax.random.normal(kz2, (B2, D), dtype=jnp.float32)
    out2 = jax.block_until_ready(
        discriminator_forward(z2, w1, b1, w2, b2, w3, b3))
    ref2 = _reference_forward(z2, w1, b1, w2, b2, w3, b3)
    assert out2.shape == (B2, 1)
    assert jnp.allclose(out2, ref2, rtol=2e-2, atol=1e-2), "ragged mismatch"

    print("KERNEL_OK")
</pallas_src>

<mosaic_0001>
module attributes {stable_mosaic.version = 11 : i64} {
  func.func @_disc_kernel(%arg0: i32, %arg1: memref<8x64xf32, #tpu.memory_space<vmem>>, %arg2: memref<64x512xbf16, #tpu.memory_space<vmem>>, %arg3: memref<1x512xf32, #tpu.memory_space<vmem>>, %arg4: memref<512x256xbf16, #tpu.memory_space<vmem>>, %arg5: memref<1x256xf32, #tpu.memory_space<vmem>>, %arg6: memref<1x256xf32, #tpu.memory_space<vmem>>, %arg7: memref<1x1xf32, #tpu.memory_space<vmem>>, %arg8: memref<8x1xf32, #tpu.memory_space<vmem>>) attributes {dimension_semantics = [#tpu.dimension_semantics<parallel>], iteration_bounds = array<i64: 1>, scalar_prefetch = 0 : i64, scratch_operands = 0 : i64, tpu.core_type = #tpu.core_type<tc>, window_params = [{transform_indices = @transform_0, window_bounds = array<i64: 8, 64>}, {pipeline_mode = #tpu.pipeline_mode<synchronous>, transform_indices = @transform_1, window_bounds = array<i64: 64, 512>}, {pipeline_mode = #tpu.pipeline_mode<synchronous>, transform_indices = @transform_2, window_bounds = array<i64: 1, 512>}, {pipeline_mode = #tpu.pipeline_mode<synchronous>, transform_indices = @transform_3, window_bounds = array<i64: 512, 256>}, {pipeline_mode = #tpu.pipeline_mode<synchronous>, transform_indices = @transform_4, window_bounds = array<i64: 1, 256>}, {pipeline_mode = #tpu.pipeline_mode<synchronous>, transform_indices = @transform_5, window_bounds = array<i64: 1, 256>}, {pipeline_mode = #tpu.pipeline_mode<synchronous>, transform_indices = @transform_6, window_bounds = array<i64: 1, 1>}, {transform_indices = @transform_7, window_bounds = array<i64: 8, 1>}]} {
    %c0 = arith.constant 0 : index
    %c0_0 = arith.constant 0 : index
    %0 = vector.load %arg1[%c0, %c0_0] : memref<8x64xf32, #tpu.memory_space<vmem>>, vector<8x64xf32>
    %1 = arith.truncf %0 : vector<8x64xf32> to vector<8x64xbf16>
    %c0_1 = arith.constant 0 : index
    %c0_2 = arith.constant 0 : index
    %2 = vector.load %arg2[%c0_1, %c0_2] : memref<64x512xbf16, #tpu.memory_space<vmem>>, vector<64x512xbf16>
    %cst = arith.constant dense<0.000000e+00> : vector<8x512xf32>
    %3 = tpu.matmul %1, %2, %cst {dimension_numbers = #tpu.dot_dimension_numbers<[1], [0], [0], [1], [0, 0, 1, 1], [], []>} : vector<8x64xbf16>, vector<64x512xbf16>, vector<8x512xf32> -> vector<8x512xf32>
    %c0_3 = arith.constant 0 : index
    %c0_4 = arith.constant 0 : index
    %4 = vector.load %arg3[%c0_3, %c0_4] : memref<1x512xf32, #tpu.memory_space<vmem>>, vector<1x512xf32>
    %5 = vector.broadcast %4 : vector<1x512xf32> to vector<8x512xf32>
    %6 = arith.addf %3, %5 : vector<8x512xf32>
    %cst_5 = arith.constant 2.000000e-01 : f32
    %7 = vector.broadcast %cst_5 : f32 to vector<8x512xf32>
    %8 = arith.mulf %7, %6 : vector<8x512xf32>
    %9 = arith.maximumf %6, %8 : vector<8x512xf32>
    %10 = arith.truncf %9 : vector<8x512xf32> to vector<8x512xbf16>
    %c0_6 = arith.constant 0 : index
    %c0_7 = arith.constant 0 : index
    %11 = vector.load %arg4[%c0_6, %c0_7] : memref<512x256xbf16, #tpu.memory_space<vmem>>, vector<512x256xbf16>
    %cst_8 = arith.constant dense<0.000000e+00> : vector<8x256xf32>
    %12 = tpu.matmul %10, %11, %cst_8 {dimension_numbers = #tpu.dot_dimension_numbers<[1], [0], [0], [1], [0, 0, 1, 1], [], []>} : vector<8x512xbf16>, vector<512x256xbf16>, vector<8x256xf32> -> vector<8x256xf32>
    %c0_9 = arith.constant 0 : index
    %c0_10 = arith.constant 0 : index
    %13 = vector.load %arg5[%c0_9, %c0_10] : memref<1x256xf32, #tpu.memory_space<vmem>>, vector<1x256xf32>
    %14 = vector.broadcast %13 : vector<1x256xf32> to vector<8x256xf32>
    %15 = arith.addf %12, %14 : vector<8x256xf32>
    %cst_11 = arith.constant 2.000000e-01 : f32
    %16 = vector.broadcast %cst_11 : f32 to vector<8x256xf32>
    %17 = arith.mulf %16, %15 : vector<8x256xf32>
    %18 = arith.maximumf %15, %17 : vector<8x256xf32>
    %c0_12 = arith.constant 0 : index
    %c0_13 = arith.constant 0 : index
    %19 = vector.load %arg6[%c0_12, %c0_13] : memref<1x256xf32, #tpu.memory_space<vmem>>, vector<1x256xf32>
    %20 = vector.broadcast %19 : vector<1x256xf32> to vector<8x256xf32>
    %21 = arith.mulf %18, %20 : vector<8x256xf32>
    %cst_14 = arith.constant dense<0.000000e+00> : vector<8xf32>
    %22 = vector.multi_reduction <add>, %21, %cst_14 [1] : vector<8x256xf32> to vector<8xf32>
    %23 = vector.shape_cast %22 : vector<8xf32> to vector<8x1xf32>
    %c0_15 = arith.constant 0 : index
    %c0_16 = arith.constant 0 : index
    %24 = vector.load %arg7[%c0_15, %c0_16] : memref<1x1xf32, #tpu.memory_space<vmem>>, vector<1x1xf32>
    %25 = vector.broadcast %24 : vector<1x1xf32> to vector<8x1xf32>
    %26 = arith.addf %23, %25 : vector<8x1xf32>
    %cst_17 = arith.constant 0.000000e+00 : f32
    %27 = vector.broadcast %cst_17 : f32 to vector<8x1xf32>
    %28 = arith.subf %27, %26 : vector<8x1xf32>
    %29 = math.exp %28 : vector<8x1xf32>
    %cst_18 = arith.constant 1.000000e+00 : f32
    %30 = vector.broadcast %cst_18 : f32 to vector<8x1xf32>
    %31 = arith.addf %30, %29 : vector<8x1xf32>
    %32 = tpu.reciprocal %31 {approx = true} : vector<8x1xf32> -> vector<8x1xf32>
    %c0_19 = arith.constant 0 : index
    %c0_20 = arith.constant 0 : index
    %33 = vector.load %arg8[%c0_19, %c0_20] : memref<8x1xf32, #tpu.memory_space<vmem>>, vector<8x1xf32>
    tpu.vector_store %arg8[%c0_19, %c0_20], %32 {strides = array<i32>} : memref<8x1xf32, #tpu.memory_space<vmem>>, vector<8x1xf32>,
    return
  }
  func.func @transform_0(%arg0: i32) -> (i32, i32) {
    %c0_i32 = arith.constant 0 : i32
    %c0_i32_0 = arith.constant 0 : i32
    return %arg0, %c0_i32 : i32, i32
  }
  func.func @transform_1(%arg0: i32) -> (i32, i32) {
    %c0_i32 = arith.constant 0 : i32
    %c0_i32_0 = arith.constant 0 : i32
    %c0_i32_1 = arith.constant 0 : i32
    return %c0_i32, %c0_i32_0 : i32, i32
  }
  func.func @transform_2(%arg0: i32) -> (i32, i32) {
    %c0_i32 = arith.constant 0 : i32
    %c0_i32_0 = arith.constant 0 : i32
    %c0_i32_1 = arith.constant 0 : i32
    return %c0_i32, %c0_i32_0 : i32, i32
  }
  func.func @transform_3(%arg0: i32) -> (i32, i32) {
    %c0_i32 = arith.constant 0 : i32
    %c0_i32_0 = arith.constant 0 : i32
    %c0_i32_1 = arith.constant 0 : i32
    return %c0_i32, %c0_i32_0 : i32, i32
  }
  func.func @transform_4(%arg0: i32) -> (i32, i32) {
    %c0_i32 = arith.constant 0 : i32
    %c0_i32_0 = arith.constant 0 : i32
    %c0_i32_1 = arith.constant 0 : i32
    return %c0_i32, %c0_i32_0 : i32, i32
  }
  func.func @transform_5(%arg0: i32) -> (i32, i32) {
    %c0_i32 = arith.constant 0 : i32
    %c0_i32_0 = arith.constant 0 : i32
    %c0_i32_1 = arith.constant 0 : i32
    return %c0_i32, %c0_i32_0 : i32, i32
  }
  func.func @transform_6(%arg0: i32) -> (i32, i32) {
    %c0_i32 = arith.constant 0 : i32
    %c0_i32_0 = arith.constant 0 : i32
    %c0_i32_1 = arith.constant 0 : i32
    return %c0_i32, %c0_i32_0 : i32, i32
  }
  func.func @transform_7(%arg0: i32) -> (i32, i32) {
    %c0_i32 = arith.constant 0 : i32
    %c0_i32_0 = arith.constant 0 : i32
    return %arg0, %c0_i32 : i32, i32
  }
}

</mosaic_0001>

<bundles_post_ra>
// kernel: discriminator_forward.1
= control target key start
LH: loop header
LB: loop body
LE: loop exit
PB: predicated region body
PF: predicated region fallthrough
CT: control target
= control target key end

     0   :  { %v973_v1 = vmov 0   ;;  %vm149_vm0 = vcmask 523264   ;;  %vm759_vm1 = vcmask 7168   ;;  %s1282_s1 = inlined_call_operand.vmem [shape: bf16[64,512], index: 1, kind: input, shape index: {}]   ;;  %s1283_s0 = inlined_call_operand.vmem [shape: f32[8,64], index: 0, kind: input, shape index: {}]   ;;  %s1284_s3 = inlined_call_operand.vmem [shape: bf16[512,256], index: 3, kind: input, shape index: {}]   ;;  %s1285_s2 = inlined_call_operand.vmem [shape: f32[1,512], index: 2, kind: input, shape index: {}]   ;;  %s1286_s6 = inlined_call_operand.<no memory space> [shape: f32[1,1], index: 6, kind: input, shape index: {}]   ;;  %s1287_s4 = inlined_call_operand.vmem [shape: f32[1,256], index: 4, kind: input, shape index: {}]   ;;  %s1288_s5 = inlined_call_operand.vmem [shape: f32[1,256], index: 5, kind: input, shape index: {}]   ;;  %s1289_s7 = inlined_call_operand.vmem [shape: f32[8,1], index: 7, kind: output, shape index: {}]  }
   0x1   :  { %v849_v0 = vld [vmem:[%s1282_s1 + $0x64] ss:$16 sps:$4 sm:$0xff]   ;;  %185 = vmatprep.mubr.bf16.mxu0 %v973_v1  ;;  %226 = vmatprep.mubr.bf16.mxu1 %v973_v1  ;;  %v851_v2 = vld [vmem:[%s1282_s1 + $0x6c] ss:$16 sps:$4 sm:$0xff]   ;;  %v853_v3 = vld [vmem:[%s1282_s1 + $0x60] ss:$16 sps:$4 sm:$0xff]  }
   0x2   :  { %161 = vmatprep.subr.bf16.mxu0 %v849_v0  ;;  %v854_v4 = vld [vmem:[%s1282_s1 + $0x68] ss:$16 sps:$4 sm:$0xff]   ;;  %202 = vmatprep.subr.bf16.mxu1 %v851_v2  ;;  %v855_v5 = vld [vmem:[%s1282_s1 + $0x44] ss:$16 sps:$4 sm:$0xff]   ;;  %v857_v6 = vld [vmem:[%s1282_s1 + $0x4c] ss:$16 sps:$4 sm:$0xff]  }
   0x3   :  { %162 = vmatpush1.bf16.msra.mxu0 %v853_v3  ;;  %203 = vmatpush1.bf16.msra.mxu1 %v854_v4  ;;  %v859_v7 = vld [vmem:[%s1282_s1 + $0x40] ss:$16 sps:$4 sm:$0xff]   ;;  %v860_v8 = vld [vmem:[%s1282_s1 + $0x48] ss:$16 sps:$4 sm:$0xff]   ;;  %v861_v9 = vld [vmem:[%s1282_s1 + $0x24] ss:$16 sps:$4 sm:$0xff]  }
   0x4   :  { %163 = vmatprep.subr.bf16.mxu0 %v855_v5  ;;  %204 = vmatprep.subr.bf16.mxu1 %v857_v6  ;;  %v863_v10 = vld [vmem:[%s1282_s1 + $0x2c] ss:$16 sps:$4 sm:$0xff]   ;;  %v865_v11 = vld [vmem:[%s1282_s1 + $0x20] ss:$16 sps:$4 sm:$0xff]   ;;  %v866_v12 = vld [vmem:[%s1282_s1 + $0x28] ss:$16 sps:$4 sm:$0xff]  }
   0x5   :  { %v867_v13 = vld [vmem:[%s1282_s1 + $0x4] ss:$16 sps:$4 sm:$0xff]   ;;  %v869_v14 = vld [vmem:[%s1282_s1 + $0xc] ss:$16 sps:$4 sm:$0xff]   ;;  %v871_v15 = vld [vmem:[%s1282_s1] ss:$16 sps:$4 sm:$0xff]  }
   0x6   :  { %v872_v16 = vld [vmem:[%s1282_s1 + $0x8] ss:$16 sps:$4 sm:$0xff]   ;;  %v29_v17 = vld [vmem:[%s1283_s0] sm:$0xff]  ;;  %v875_v18 = vld [vmem:[%s1284_s3 + $0x74] ss:$8 sps:$4 sm:$0xff]  }
   0x7   :  { %164 = vmatpush1.bf16.msra.mxu0 %v859_v7  ;;  %205 = vmatpush1.bf16.msra.mxu1 %v860_v8  ;;  %v878_v19 = vld [vmem:[%s1284_s3 + $0x174] ss:$8 sps:$4 sm:$0xff]   ;;  %v30_v20 = vpack.c.bf16 %v29_v17, %v29_v17  ;;  %v873_v21 = vld [vmem:[%s1284_s3 + $0x70] ss:$8 sps:$4 sm:$0xff]   ;;  %v881_v23 = vld [vmem:[%s1284_s3 + $0x64] ss:$8 sps:$4 sm:$0xff]  }
   0x8   :  { %165 = vmatprep.subr.bf16.mxu0 %v861_v9  ;;  %206 = vmatprep.subr.bf16.mxu1 %v863_v10  ;;  %v876_v22 = vld [vmem:[%s1284_s3 + $0x170] ss:$8 sps:$4 sm:$0xff]   ;;  %v884_v24 = vld [vmem:[%s1284_s3 + $0x164] ss:$8 sps:$4 sm:$0xff]   ;;  %v879_v25 = vld [vmem:[%s1284_s3 + $0x60] ss:$8 sps:$4 sm:$0xff]  }
   0x9   :  { %v882_v26 = vld [vmem:[%s1284_s3 + $0x160] ss:$8 sps:$4 sm:$0xff]   ;;  %v887_v27 = vld [vmem:[%s1284_s3 + $0x54] ss:$8 sps:$4 sm:$0xff]   ;;  %v885_v29 = vld [vmem:[%s1284_s3 + $0x50] ss:$8 sps:$4 sm:$0xff]  }
   0xa   :  { %v890_v28 = vld [vmem:[%s1284_s3 + $0x154] ss:$8 sps:$4 sm:$0xff]   ;;  %v888_v30 = vld [vmem:[%s1284_s3 + $0x150] ss:$8 sps:$4 sm:$0xff]   ;;  %v893_v31 = vld [vmem:[%s1284_s3 + $0x44] ss:$8 sps:$4 sm:$0xff]  }
   0xb   :  { %166 = vmatpush1.bf16.msra.mxu0 %v865_v11  ;;  %207 = vmatpush1.bf16.msra.mxu1 %v866_v12  ;;  %v896_v32 = vld [vmem:[%s1284_s3 + $0x144] ss:$8 sps:$4 sm:$0xff]   ;;  %v891_v33 = vld [vmem:[%s1284_s3 + $0x40] ss:$8 sps:$4 sm:$0xff]   ;;  %v899_v35 = vld [vmem:[%s1284_s3 + $0x34] ss:$8 sps:$4 sm:$0xff]  }
   0xc   :  { %167 = vmatprep.subr.bf16.mxu0 %v867_v13  ;;  %208 = vmatprep.subr.bf16.mxu1 %v869_v14  ;;  %v894_v34 = vld [vmem:[%s1284_s3 + $0x140] ss:$8 sps:$4 sm:$0xff]   ;;  %v902_v36 = vld [vmem:[%s1284_s3 + $0x134] ss:$8 sps:$4 sm:$0xff]   ;;  %v897_v37 = vld [vmem:[%s1284_s3 + $0x30] ss:$8 sps:$4 sm:$0xff]  }
   0xd   :  { %v900_v38 = vld [vmem:[%s1284_s3 + $0x130] ss:$8 sps:$4 sm:$0xff]   ;;  %v905_v39 = vld [vmem:[%s1284_s3 + $0x24] ss:$8 sps:$4 sm:$0xff]   ;;  %v903_v41 = vld [vmem:[%s1284_s3 + $0x20] ss:$8 sps:$4 sm:$0xff]  }
   0xe   :  { %v908_v40 = vld [vmem:[%s1284_s3 + $0x124] ss:$8 sps:$4 sm:$0xff]   ;;  %v906_v42 = vld [vmem:[%s1284_s3 + $0x120] ss:$8 sps:$4 sm:$0xff]   ;;  %v911_v43 = vld [vmem:[%s1284_s3 + $0x14] ss:$8 sps:$4 sm:$0xff]  }
   0xf   :  { %168 = vmatpush1.bf16.msra.mxu0 %v871_v15  ;;  %209 = vmatpush1.bf16.msra.mxu1 %v872_v16  ;;  %v914_v44 = vld [vmem:[%s1284_s3 + $0x114] ss:$8 sps:$4 sm:$0xff]   ;;  %v909_v45 = vld [vmem:[%s1284_s3 + $0x10] ss:$8 sps:$4 sm:$0xff]   ;;  %v917_v47 = vld [vmem:[%s1284_s3 + $0x4] ss:$8 sps:$4 sm:$0xff]  }
  0x10   :  { %643 = vmatprep.subr.bf16.mxu0 %v875_v18  ;;  %684 = vmatprep.subr.bf16.mxu1 %v878_v19  ;;  %v912_v46 = vld [vmem:[%s1284_s3 + $0x110] ss:$8 sps:$4 sm:$0xff]   ;;  %v920_v48 = vld [vmem:[%s1284_s3 + $0x104] ss:$8 sps:$4 sm:$0xff]   ;;  %v915_v49 = vld [vmem:[%s1284_s3] ss:$8 sps:$4 sm:$0xff]   ;;  %v49_v19 = vlaneseq }
  0x11   :  { %v918_v50 = vld [vmem:[%s1284_s3 + $0x100] ss:$8 sps:$4 sm:$0xff]   ;;  %v923_v51 = vld [vmem:[%s1284_s3 + $0xf4] ss:$8 sps:$4 sm:$0xff]   ;;  %v921_v53 = vld [vmem:[%s1284_s3 + $0xf0] ss:$8 sps:$4 sm:$0xff]  }
  0x12   :  { %781 = vmatmul.mubr.msk.bf16.vlgmr.msra.gmra.mxu0 %vm149_vm0, %v30_v20  ;;  %782 = vmatmul.mubr.msk.bf16.vlgmr.msra.gmra.mxu1 %vm149_vm0, %v30_v20  ;;  %v926_v52 = vld [vmem:[%s1284_s3 + $0x1f4] ss:$8 sps:$4 sm:$0xff]   ;;  %v924_v54 = vld [vmem:[%s1284_s3 + $0x1f0] ss:$8 sps:$4 sm:$0xff]   ;;  %v929_v55 = vld [vmem:[%s1284_s3 + $0xe4] ss:$8 sps:$4 sm:$0xff]  }
  0x13   :  { %644 = vmatpush1.bf16.msra.mxu0 %v873_v21  ;;  %685 = vmatpush1.bf16.msra.mxu1 %v876_v22  ;;  %v932_v56 = vld [vmem:[%s1284_s3 + $0x1e4] ss:$8 sps:$4 sm:$0xff]   ;;  %v927_v57 = vld [vmem:[%s1284_s3 + $0xe0] ss:$8 sps:$4 sm:$0xff]   ;;  %v935_v59 = vld [vmem:[%s1284_s3 + $0xd4] ss:$8 sps:$4 sm:$0xff]  }
  0x14   :  { %645 = vmatprep.subr.bf16.mxu0 %v881_v23  ;;  %686 = vmatprep.subr.bf16.mxu1 %v884_v24  ;;  %v930_v58 = vld [vmem:[%s1284_s3 + $0x1e0] ss:$8 sps:$4 sm:$0xff]   ;;  %v938_v60 = vld [vmem:[%s1284_s3 + $0x1d4] ss:$8 sps:$4 sm:$0xff]   ;;  %v933_v61 = vld [vmem:[%s1284_s3 + $0xd0] ss:$8 sps:$4 sm:$0xff]  }
  0x15   :  { %v936_v62 = vld [vmem:[%s1284_s3 + $0x1d0] ss:$8 sps:$4 sm:$0xff]   ;;  %v941_v63 = vld [vmem:[%s1284_s3 + $0xc4] ss:$8 sps:$4 sm:$0xff]   ;;  %v939_v1 = vld [vmem:[%s1284_s3 + $0xc0] ss:$8 sps:$4 sm:$0xff]  }
  0x16   :  { %v944_v0 = vld [vmem:[%s1284_s3 + $0x1c4] ss:$8 sps:$4 sm:$0xff]   ;;  %v942_v2 = vld [vmem:[%s1284_s3 + $0x1c0] ss:$8 sps:$4 sm:$0xff]   ;;  %v947_v3 = vld [vmem:[%s1284_s3 + $0xb4] ss:$8 sps:$4 sm:$0xff]  }
  0x17   :  { %646 = vmatpush1.bf16.msra.mxu0 %v879_v25  ;;  %687 = vmatpush1.bf16.msra.mxu1 %v882_v26  ;;  %v950_v4 = vld [vmem:[%s1284_s3 + $0x1b4] ss:$8 sps:$4 sm:$0xff]   ;;  %v945_v5 = vld [vmem:[%s1284_s3 + $0xb0] ss:$8 sps:$4 sm:$0xff]   ;;  %v953_v7 = vld [vmem:[%s1284_s3 + $0xa4] ss:$8 sps:$4 sm:$0xff]  }
  0x18   :  { %647 = vmatprep.subr.bf16.mxu0 %v887_v27  ;;  %688 = vmatprep.subr.bf16.mxu1 %v890_v28  ;;  %v948_v6 = vld [vmem:[%s1284_s3 + $0x1b0] ss:$8 sps:$4 sm:$0xff]   ;;  %v956_v8 = vld [vmem:[%s1284_s3 + $0x1a4] ss:$8 sps:$4 sm:$0xff]   ;;  %v951_v9 = vld [vmem:[%s1284_s3 + $0xa0] ss:$8 sps:$4 sm:$0xff]  }
  0x19   :  { %v954_v10 = vld [vmem:[%s1284_s3 + $0x1a0] ss:$8 sps:$4 sm:$0xff]   ;;  %v959_v11 = vld [vmem:[%s1284_s3 + $0x94] ss:$8 sps:$4 sm:$0xff]   ;;  %v957_v13 = vld [vmem:[%s1284_s3 + $0x90] ss:$8 sps:$4 sm:$0xff]  }
  0x1a   :  { %v962_v12 = vld [vmem:[%s1284_s3 + $0x194] ss:$8 sps:$4 sm:$0xff]   ;;  %v960_v14 = vld [vmem:[%s1284_s3 + $0x190] ss:$8 sps:$4 sm:$0xff]   ;;  %v965_v15 = vld [vmem:[%s1284_s3 + $0x84] ss:$8 sps:$4 sm:$0xff]  }
  0x1b   :  { %648 = vmatpush1.bf16.msra.mxu0 %v885_v29  ;;  %689 = vmatpush1.bf16.msra.mxu1 %v888_v30  ;;  %v968_v16 = vld [vmem:[%s1284_s3 + $0x184] ss:$8 sps:$4 sm:$0xff]   ;;  %v963_v17 = vld [vmem:[%s1284_s3 + $0x80] ss:$8 sps:$4 sm:$0xff]   ;;  %v50_v20 = vshrl.u32 %v49_v19, 7 }
  0x1c   :  { %649 = vmatprep.subr.bf16.mxu0 %v893_v31  ;;  %690 = vmatprep.subr.bf16.mxu1 %v896_v32  ;;  %v966_v18 = vld [vmem:[%s1284_s3 + $0x180] ss:$8 sps:$4 sm:$0xff]  }
  0x1d   :  { %v1257_v21 = vsub.s32 0, %v50_v20  ;;  %v59_v22 = vsub.s32 2, %v50_v20  ;;  %v47_v23 = vld [vmem:[%s1285_s2] sm:$0xf]  ;;  %v1262_v24 = vsub.s32 1, %v50_v20  ;;  %v63_v25 = vsub.s32 3, %v50_v20 }
  0x1f   :  { %650 = vmatpush1.bf16.msra.mxu0 %v891_v33  ;;  %691 = vmatpush1.bf16.msra.mxu1 %v894_v34  ;;  %v52_v26 = vrot.slane %v47_v23, %v1257_v21  ;;  %v60_v27 = vrot.slane %v47_v23, %v59_v22  ;;  %v56_v28 = vrot.slane %v47_v23, %v1262_v24 }
  0x20   :  { %651 = vmatprep.subr.bf16.mxu0 %v899_v35  ;;  %692 = vmatprep.subr.bf16.mxu1 %v902_v36  ;;  %v64_v29 = vrot.slane %v47_v23, %v63_v25 }
  0x23   :  { %652 = vmatpush1.bf16.msra.mxu0 %v897_v37  ;;  %693 = vmatpush1.bf16.msra.mxu1 %v900_v38 }
  0x24   :  { %653 = vmatprep.subr.bf16.mxu0 %v905_v39  ;;  %694 = vmatprep.subr.bf16.mxu1 %v908_v40 }
  0x27   :  { %654 = vmatpush1.bf16.msra.mxu0 %v903_v41  ;;  %695 = vmatpush1.bf16.msra.mxu1 %v906_v42 }
  0x28   :  { %655 = vmatprep.subr.bf16.mxu0 %v911_v43  ;;  %696 = vmatprep.subr.bf16.mxu1 %v914_v44 }
  0x2b   :  { %656 = vmatpush1.bf16.msra.mxu0 %v909_v45  ;;  %697 = vmatpush1.bf16.msra.mxu1 %v912_v46 }
  0x2c   :  { %657 = vmatprep.subr.bf16.mxu0 %v917_v47  ;;  %698 = vmatprep.subr.bf16.mxu1 %v920_v48 }
  0x2f   :  { %658 = vmatpush1.bf16.msra.mxu0 %v915_v49  ;;  %699 = vmatpush1.bf16.msra.mxu1 %v918_v50 }
  0x30   :  { %659 = vmatprep.subr.bf16.mxu0 %v923_v51  ;;  %700 = vmatprep.subr.bf16.mxu1 %v926_v52 }
  0x33   :  { %660 = vmatpush2.bf16.msra.mxu0 %v921_v53  ;;  %701 = vmatpush2.bf16.msra.mxu1 %v924_v54  ;;  %v12_v54 = vstv %s1286_s6 }
  0x34   :  { %661 = vmatprep.subr.bf16.mxu0 %v929_v55  ;;  %702 = vmatprep.subr.bf16.mxu1 %v932_v56  ;;  %13 = vst [vmem:[#allocation2] sm:$0x1] %v12_v54  ;;  %v311_v55 = vld [vmem:[%s1287_s4] sm:$0x3] }
  0x35   :  { %v316_v56 = vrot.slane %v311_v55, %v1257_v21 }
  0x37   :  { %662 = vmatpush2.bf16.msra.mxu0 %v927_v57  ;;  %703 = vmatpush2.bf16.msra.mxu1 %v930_v58  ;;  %v320_v57 = vrot.slane %v311_v55, %v1262_v24 }
  0x38   :  { %663 = vmatprep.subr.bf16.mxu0 %v935_v59  ;;  %704 = vmatprep.subr.bf16.mxu1 %v938_v60 }
  0x3b   :  { %664 = vmatpush2.bf16.msra.mxu0 %v933_v61  ;;  %705 = vmatpush2.bf16.msra.mxu1 %v936_v62 }
  0x3c   :  { %665 = vmatprep.subr.bf16.mxu0 %v941_v63  ;;  %706 = vmatprep.subr.bf16.mxu1 %v944_v0 }
  0x3f   :  { %666 = vmatpush2.bf16.msra.mxu0 %v939_v1  ;;  %707 = vmatpush2.bf16.msra.mxu1 %v942_v2 }
  0x40   :  { %667 = vmatprep.subr.bf16.mxu0 %v947_v3  ;;  %708 = vmatprep.subr.bf16.mxu1 %v950_v4  ;;  %v729_v3 = vld [vmem:[%s1288_s5] sm:$0x3] }
  0x43   :  { %668 = vmatpush2.bf16.msra.mxu0 %v945_v5  ;;  %709 = vmatpush2.bf16.msra.mxu1 %v948_v6 }
  0x44   :  { %669 = vmatprep.subr.bf16.mxu0 %v953_v7  ;;  %710 = vmatprep.subr.bf16.mxu1 %v956_v8 }
  0x47   :  { %670 = vmatpush2.bf16.msra.mxu0 %v951_v9  ;;  %711 = vmatpush2.bf16.msra.mxu1 %v954_v10  ;;  %v734_v10 = vrot.slane %v729_v3, %v1257_v21 }
  0x48   :  { %671 = vmatprep.subr.bf16.mxu0 %v959_v11  ;;  %712 = vmatprep.subr.bf16.mxu1 %v962_v12  ;;  %v738_v11 = vrot.slane %v729_v3, %v1262_v24 }
  0x4b   :  { %672 = vmatpush2.bf16.msra.mxu0 %v957_v13  ;;  %713 = vmatpush2.bf16.msra.mxu1 %v960_v14 }
  0x4c   :  { %673 = vmatprep.subr.bf16.mxu0 %v965_v15  ;;  %714 = vmatprep.subr.bf16.mxu1 %v968_v16  ;;  %v847_v16 = vld [vmem:[#allocation2] ss:$0 sm:$0xff] }
  0x4f   :  { %674 = vmatpush2.bf16.msra.mxu0 %v963_v17  ;;  %715 = vmatpush2.bf16.msra.mxu1 %v966_v18 }
  0xd2   :  { %v187_v30 = vpop.f32.mrf.mxu0  ;;  %v228_v31 = vpop.f32.mrf.mxu1 }
  0xd3   :  { %v188_v32 = vadd.f32 %v187_v30, %v52_v26  ;;  %v229_v33 = vadd.f32 %v228_v31, %v60_v27 }
  0xd4   :  { %v189_v34 = vpop.f32.mrf.mxu0  ;;  %v230_v35 = vpop.f32.mrf.mxu1 }
  0xd5   :  { %v235_v36 = vmul.f32 0.2, %v188_v32  ;;  %v237_v37 = vmul.f32 0.2, %v229_v33  ;;  %v190_v38 = vadd.f32 %v189_v34, %v56_v28  ;;  %v231_v39 = vadd.f32 %v230_v35, %v64_v29 }
  0xd6   :  { %v191_v40 = vpop.f32.mrf.mxu0  ;;  %v232_v41 = vpop.f32.mrf.mxu1 }
  0xd7   :  { %v236_v42 = vmul.f32 0.2, %v190_v38  ;;  %v238_v43 = vmul.f32 0.2, %v231_v39  ;;  %v239_v44 = vmax.f32 %v188_v32, %v235_v36  ;;  %v241_v45 = vmax.f32 %v229_v33, %v237_v37 }
  0xd8   :  { %v192_v46 = vpop.f32.mrf.mxu0  ;;  %v233_v47 = vpop.f32.mrf.mxu1 }
  0xd9   :  { %v240_v48 = vmax.f32 %v190_v38, %v236_v42  ;;  %v242_v49 = vmax.f32 %v231_v39, %v238_v43  ;;  %v243_v52 = vpack.c.bf16 %v239_v44, %v239_v44  ;;  %v245_v53 = vpack.c.bf16 %v241_v45, %v241_v45 }
  0xdb   :  { %v244_v50 = vpack.c.bf16 %v240_v48, %v240_v48  ;;  %v246_v51 = vpack.c.bf16 %v242_v49, %v242_v49 }
  0xdd   :  { %675 = vmatprep.mubr.bf16.mxu0 %v244_v50  ;;  %716 = vmatprep.mubr.bf16.mxu1 %v246_v51 }
  0xde   :  { %676 = vmatmul.mubr.bf16.vlgmr.msra.gmra.mxu0 %v243_v52  ;;  %717 = vmatmul.mubr.bf16.vlgmr.msra.gmra.mxu1 %v245_v53 }
 0x19e   :  { %v677_v58 = vpop.f32.mrf.mxu0  ;;  %v718_v59 = vpop.f32.mrf.mxu1 }
 0x19f   :  { %v678_v60 = vadd.f32 %v677_v58, %v316_v56 }
 0x1a0   :  { %v679_v61 = vpop.f32.mrf.mxu0  ;;  %v720_v62 = vpop.f32.mrf.mxu1 }
 0x1a1   :  { %v719_v63 = vadd.f32 %v718_v59, %v678_v60  ;;  %v680_v0 = vadd.f32 %v679_v61, %v320_v57 }
 0x1a2   :  { %v681_v1 = vpop.f32.mrf.mxu0  ;;  %v722_v2 = vpop.f32.mrf.mxu1 }
 0x1a3   :  { %v725_v4 = vmul.f32 0.2, %v719_v63  ;;  %v721_v5 = vadd.f32 %v720_v62, %v680_v0 }
 0x1a4   :  { %v682_v6 = vpop.f32.mrf.mxu0  ;;  %v723_v7 = vpop.f32.mrf.mxu1 }
 0x1a5   :  { %v727_v8 = vmax.f32 %v719_v63, %v725_v4  ;;  %v726_v9 = vmul.f32 0.2, %v721_v5 }
 0x1a7   :  { %v728_v12 = vmax.f32 %v721_v5, %v726_v9  ;;  %v741_v13 = vmul.f32 %v734_v10, %v727_v8 }
 0x1a9   :  { %v742_v14 = vmul.f32 %v738_v11, %v728_v12 }
 0x1ab   :  { %v743_v15 = vadd.f32 %v742_v14, %v741_v13 }
 0x1ad   :  { %744 = vadd.xlane.f32.xlu0 %v743_v15 }
 0x236   :  { %v745_v17 = vpop.xlane.xlu0 %744 }
 0x237   :  { %v753_v18 = vadd.f32 %v847_v16, %v745_v17 }
 0x239   :  { %v754_v19 = vsub.f32 0.0, %v753_v18 }
 0x23b   :  { %v755_v20 = vmul.f32 1.442695, %v754_v19 }
 0x23d   :  { %969 = vpow2.f32 %v755_v20 }
 0x24a   :  { %v970_v22 = vpop.eup %969 }
 0x24b   :  { %v757_v23 = vadd.f32 1.0, %v970_v22 }
 0x24d   :  { %971 = vrcp.f32 %v757_v23 }
 0x25a   :  { %v972_v25 = vpop.eup %971 }
 0x25b   :  { %760 = vst.msk [vmem:[%s1289_s7] sm:$0xff] %vm759_vm1, %v972_v25 }

</bundles_post_ra>
